<compile_context>
chip_gen: v7x
topology: tpu7x:2x2x1
jax: 0.10.0
libtpu: 0.0.40
codegen_flags: <defaults>
</compile_context>

<pallas_src>
import functools
import math

import jax
import jax.numpy as jnp
import numpy as np
from jax import lax
from jax.experimental import pallas as pl
from jax.experimental.pallas import tpu as pltpu

LANE = 128
SUBLANE = 8


# ----------------------------------------------------------------------------
# Helpers
# ----------------------------------------------------------------------------
def _round_up(n, m):
    return ((n + m - 1) // m) * m


def _softplus(x):
    # Matches torch.nn.functional.softplus (beta=1, threshold=20).
    return jnp.where(x > 20.0, x, jnp.log1p(jnp.exp(jnp.minimum(x, 20.0))))


# ----------------------------------------------------------------------------
# Kernel
# ----------------------------------------------------------------------------
def deeponet_fused_kernel(row_offs, in_pads, out_pads, oh_pad, output_size,
                          x_ref, w_ref, b_ref, sel_ref, out_ref):
    """Fused branch+trunk MLP chain, contraction and softplus heads.

    x_ref  : (B_pad, 128)  lane-padded fused [branch | trunk | 0...] input
    w_ref  : (sum(in_pads), max(out_pads)) weight slab; layer l occupies rows
             [row_offs[l], row_offs[l]+in_pads[l]), cols [0, out_pads[l]).
             Final layer: cols [0, oh_pad) = branch, [oh_pad, 2*oh_pad) =
             trunk replicated output_size times.
    b_ref  : (8, max(out_pads)) bias slab, layer l at row l.
    sel_ref: (oh_pad, 128) 0/1 block-diagonal selector (precomputed input).
    out_ref: (B_pad, 128); lane 0 = delta_C (raw), lanes 1..output_size-1 =
             softplus heads, lanes >= output_size = 0.
    """
    n_layers = len(row_offs)
    x = x_ref[...]
    for l in range(n_layers):
        r0, din, dout = row_offs[l], in_pads[l], out_pads[l]
        w = w_ref[r0:r0 + din, 0:dout]          # full (8,128)-tile aligned slice
        b = b_ref[l:l + 1, 0:dout]
        x = jnp.dot(x, w, preferred_element_type=jnp.float32) + b
        if l < n_layers - 1:
            x = jnp.tanh(x)

    # x: (B, 2*oh_pad) = [branch_out | trunk_out replicated O times]
    prod = x[:, 0:oh_pad] * x[:, oh_pad:2 * oh_pad]          # (B, oh_pad), VPU
    combined = jnp.dot(prod, sel_ref[...],
                       preferred_element_type=jnp.float32)   # (B, 128), MXU

    lane = lax.broadcasted_iota(jnp.int32, combined.shape, 1)
    out = jnp.where(lane == 0, combined, _softplus(combined))
    out_ref[...] = jnp.where(lane < output_size, out, 0.0)


# ----------------------------------------------------------------------------
# One-time, host-side (numpy) parameter packing.
# Block-diagonal branch/trunk fusion + (8,128)-tile padding + trunk
# last-layer replication + selector construction.
# ----------------------------------------------------------------------------
def pack_deeponet_params(branch_params, trunk_params, hidden_size, output_size):
    bp = [np.asarray(p, np.float32) for p in branch_params]
    tp = [np.asarray(p, np.float32) for p in trunk_params]
    n_layers = len(bp) // 2
    O, H = output_size, hidden_size
    OH = O * H
    oh_pad = _round_up(OH, LANE)

    in_pads, out_pads = [], []
    for l in range(n_layers):
        bw, tw = bp[2 * l], tp[2 * l]
        din = bw.shape[0] + tw.shape[0]
        din_pad = _round_up(din, LANE) if l == 0 else out_pads[l - 1]
        if l == n_layers - 1:
            dout_pad = 2 * oh_pad                  # branch | replicated trunk
        else:
            dout_pad = _round_up(bw.shape[1] + tw.shape[1], LANE)
        in_pads.append(din_pad)
        out_pads.append(dout_pad)

    max_lanes = max(out_pads)
    row_offs, r = [], 0
    for l in range(n_layers):
        row_offs.append(r)
        r += in_pads[l]
    total_rows = r

    w_slab = np.zeros((total_rows, max_lanes), np.float32)
    b_slab = np.zeros((_round_up(n_layers, SUBLANE), max_lanes), np.float32)

    for l in range(n_layers):
        bw, bb = bp[2 * l], bp[2 * l + 1].reshape(-1)
        tw, tb = tp[2 * l], tp[2 * l + 1].reshape(-1)
        r0 = row_offs[l]
        if l == n_layers - 1:
            # branch part: rows 0..bdin-1, cols 0..OH-1
            w_slab[r0:r0 + bw.shape[0], 0:bw.shape[1]] = bw
            b_slab[l, 0:bb.shape[0]] = bb
            # trunk part replicated O times: rows bdin.., cols oh_pad + o*H ..
            tr0 = r0 + bw.shape[0]
            for o in range(O):
                c0 = oh_pad + o * H
                w_slab[tr0:tr0 + tw.shape[0], c0:c0 + tw.shape[1]] = tw
                b_slab[l, c0:c0 + tb.shape[0]] = tb
        else:
            w_slab[r0:r0 + bw.shape[0], 0:bw.shape[1]] = bw
            w_slab[r0 + bw.shape[0]:r0 + bw.shape[0] + tw.shape[0],
                   bw.shape[1]:bw.shape[1] + tw.shape[1]] = tw
            b_slab[l, 0:bb.shape[0]] = bb
            b_slab[l, bb.shape[0]:bb.shape[0] + tb.shape[0]] = tb

    # Selector: combined[:, o] = sum_h prod[:, o*H + h]
    out_lanes = max(LANE, _round_up(O, LANE))
    sel = np.zeros((oh_pad, out_lanes), np.float32)
    for o in range(O):
        sel[o * H:(o + 1) * H, o] = 1.0

    meta = dict(
        row_offs=tuple(row_offs),
        in_pads=tuple(in_pads),
        out_pads=tuple(out_pads),
        oh_pad=oh_pad,
        out_lanes=out_lanes,
        output_size=O,
        branch_in=bp[0].shape[0],
        trunk_in=tp[0].shape[0],
    )
    return jnp.asarray(w_slab), jnp.asarray(b_slab), jnp.asarray(sel), meta


# ----------------------------------------------------------------------------
# Model factory: pack once, return a jitted forward (pad + kernel + slices
# all inside one jit so XLA fuses the tiny pre/post ops).
# ----------------------------------------------------------------------------
def make_deeponet_forward(branch_params, trunk_params, hidden_size, output_size):
    w_slab, b_slab, sel, meta = pack_deeponet_params(
        branch_params, trunk_params, hidden_size, output_size)

    row_offs = meta["row_offs"]
    in_pads = meta["in_pads"]
    out_pads = meta["out_pads"]
    oh_pad = meta["oh_pad"]
    out_lanes = meta["out_lanes"]
    O = meta["output_size"]
    bi, ti = meta["branch_in"], meta["trunk_in"]
    n_layers = len(row_offs)

    kernel = functools.partial(deeponet_fused_kernel, row_offs, in_pads,
                               out_pads, oh_pad, O)

    @jax.jit
    def forward_impl(branch_input, trunk_input, w_slab, b_slab, sel):
        B = branch_input.shape[0]
        B_pad = _round_up(max(B, SUBLANE), SUBLANE)

        # Lane-padded fused input slab (one (B_pad, 128) VMEM DMA).
        x = jnp.zeros((B_pad, in_pads[0]), jnp.float32)
        x = x.at[:B, 0:bi].set(branch_input.astype(jnp.float32))
        x = x.at[:B, bi:bi + ti].set(trunk_input.astype(jnp.float32))

        flops = sum(2 * B_pad * in_pads[l] * out_pads[l] for l in range(n_layers))
        flops += 2 * B_pad * oh_pad * out_lanes
        trans = B_pad * (sum(out_pads[:-1]) + out_lanes)
        bytes_acc = 4 * (x.size + w_slab.size + b_slab.size + sel.size
                         + B_pad * out_lanes)

        out = pl.pallas_call(
            kernel,
            out_shape=jax.ShapeDtypeStruct((B_pad, out_lanes), jnp.float32),
            in_specs=[pl.BlockSpec(memory_space=pltpu.MemorySpace.VMEM)] * 4,
            out_specs=pl.BlockSpec(memory_space=pltpu.MemorySpace.VMEM),
            cost_estimate=pl.CostEstimate(flops=flops, transcendentals=trans,
                                          bytes_accessed=bytes_acc),
        )(x, w_slab, b_slab, sel)

        return (out[:B, 0:1], out[:B, 1:2], out[:B, 2:3], out[:B, 3:4])

    def forward(branch_input, trunk_input, C0_values):
        # C0_values accepted (PyTorch signature) but unused in forward.
        del C0_values
        return forward_impl(branch_input, trunk_input, w_slab, b_slab, sel)

    return forward


# ----------------------------------------------------------------------------
# Deterministic parameter construction (mimics nn.Linear default init)
# ----------------------------------------------------------------------------
def make_linear_params(key, in_dim, out_dim):
    kw, kb = jax.random.split(key)
    bound = 1.0 / math.sqrt(in_dim)
    w = jax.random.uniform(kw, (in_dim, out_dim), jnp.float32, -bound, bound)
    b = jax.random.uniform(kb, (1, out_dim), jnp.float32, -bound, bound)
    return w, b


def make_mlp_params(key, in_dim, hidden, out_dim):
    dims = [in_dim, hidden, hidden // 2, hidden // 4, hidden // 8, out_dim]
    params = []
    keys = jax.random.split(key, 5)
    for i in range(5):
        w, b = make_linear_params(keys[i], dims[i], dims[i + 1])
        params += [w, b]
    return params


# ----------------------------------------------------------------------------
# Pure-JAX reference for correctness check (unfused, unpadded params)
# ----------------------------------------------------------------------------
def reference_forward(branch_input, trunk_input, branch_params, trunk_params,
                      output_size, hidden_size):
    def mlp(x, params):
        for layer in range(5):
            x = x @ params[2 * layer] + params[2 * layer + 1]
            if layer < 4:
                x = jnp.tanh(x)
        return x

    B = branch_input.shape[0]
    b_out = mlp(branch_input, branch_params).reshape(B, output_size, hidden_size)
    t_out = mlp(trunk_input, trunk_params).reshape(B, hidden_size, 1)
    combined = jnp.squeeze(b_out @ t_out, axis=2)
    sp = jax.nn.softplus
    return (combined[:, 0:1], sp(combined[:, 1:2]),
            sp(combined[:, 2:3]), sp(combined[:, 3:4]))


# ----------------------------------------------------------------------------
if __name__ == "__main__":
    # Small shapes consistent with the module's forward.
    batch = 8
    branch_input_size = 8
    trunk_input_size = 2
    hidden_size = 32
    output_size = 4   # forward consumes columns 0..3 of the combined output

    key = jax.random.PRNGKey(0)
    k_bi, k_ti, k_c0, k_bp, k_tp = jax.random.split(key, 5)

    branch_input = jax.random.normal(k_bi, (batch, branch_input_size), jnp.float32)
    trunk_input = jax.random.normal(k_ti, (batch, trunk_input_size), jnp.float32)
    C0_values = jax.random.normal(k_c0, (batch, 1), jnp.float32)  # unused in forward

    branch_params = make_mlp_params(k_bp, branch_input_size, hidden_size,
                                    output_size * hidden_size)
    trunk_params = make_mlp_params(k_tp, trunk_input_size, hidden_size,
                                   hidden_size)

    # One-time packing at "model init"; per-call path is a single jit.
    deeponet_forward = make_deeponet_forward(branch_params, trunk_params,
                                             hidden_size, output_size)

    delta_C, qe, k2, Ct = deeponet_forward(branch_input, trunk_input, C0_values)
    jax.block_until_ready((delta_C, qe, k2, Ct))

    # Correctness check against a pure-JAX reference (unfused params).
    ref = reference_forward(branch_input, trunk_input, branch_params,
                            trunk_params, output_size, hidden_size)
    for got, want in zip((delta_C, qe, k2, Ct), ref):
        np.testing.assert_allclose(np.asarray(got), np.asarray(want),
                                   rtol=1e-5, atol=1e-5)

    print("KERNEL_OK")
</pallas_src>

<mosaic_0001>
module attributes {stable_mosaic.version = 11 : i64} {
  func.func @deeponet_fused_kernel(%arg0: memref<8x128xf32, #tpu.memory_space<vmem>>, %arg1: memref<640x256xf32, #tpu.memory_space<vmem>>, %arg2: memref<8x256xf32, #tpu.memory_space<vmem>>, %arg3: memref<128x128xf32, #tpu.memory_space<vmem>>, %arg4: memref<8x128xf32, #tpu.memory_space<vmem>>) attributes {dimension_semantics = [], scalar_prefetch = 0 : i64, scratch_operands = 0 : i64, tpu.core_type = #tpu.core_type<tc>} {
    %c0 = arith.constant 0 : index
    %c0_0 = arith.constant 0 : index
    %0 = vector.load %arg0[%c0, %c0_0] : memref<8x128xf32, #tpu.memory_space<vmem>>, vector<8x128xf32>
    %c0_1 = arith.constant 0 : index
    %c0_2 = arith.constant 0 : index
    %1 = vector.load %arg1[%c0_1, %c0_2] : memref<640x256xf32, #tpu.memory_space<vmem>>, vector<128x128xf32>
    %c0_3 = arith.constant 0 : index
    %c0_4 = arith.constant 0 : index
    %2 = vector.load %arg2[%c0_3, %c0_4] : memref<8x256xf32, #tpu.memory_space<vmem>>, vector<1x128xf32>
    %cst = arith.constant dense<0.000000e+00> : vector<8x128xf32>
    %3 = tpu.matmul %0, %1, %cst {dimension_numbers = #tpu.dot_dimension_numbers<[1], [0], [0], [1], [0, 0, 1, 1], [], []>} : vector<8x128xf32>, vector<128x128xf32>, vector<8x128xf32> -> vector<8x128xf32>
    %4 = vector.broadcast %2 : vector<1x128xf32> to vector<8x128xf32>
    %5 = arith.addf %3, %4 : vector<8x128xf32>
    %6 = math.tanh %5 : vector<8x128xf32>
    %c128 = arith.constant 128 : index
    %c0_5 = arith.constant 0 : index
    %7 = vector.load %arg1[%c128, %c0_5] : memref<640x256xf32, #tpu.memory_space<vmem>>, vector<128x128xf32>
    %c1 = arith.constant 1 : index
    %c0_6 = arith.constant 0 : index
    %8 = vector.load %arg2[%c1, %c0_6] : memref<8x256xf32, #tpu.memory_space<vmem>>, vector<1x128xf32>
    %cst_7 = arith.constant dense<0.000000e+00> : vector<8x128xf32>
    %9 = tpu.matmul %6, %7, %cst_7 {dimension_numbers = #tpu.dot_dimension_numbers<[1], [0], [0], [1], [0, 0, 1, 1], [], []>} : vector<8x128xf32>, vector<128x128xf32>, vector<8x128xf32> -> vector<8x128xf32>
    %10 = vector.broadcast %8 : vector<1x128xf32> to vector<8x128xf32>
    %11 = arith.addf %9, %10 : vector<8x128xf32>
    %12 = math.tanh %11 : vector<8x128xf32>
    %c256 = arith.constant 256 : index
    %c0_8 = arith.constant 0 : index
    %13 = vector.load %arg1[%c256, %c0_8] : memref<640x256xf32, #tpu.memory_space<vmem>>, vector<128x128xf32>
    %c2 = arith.constant 2 : index
    %c0_9 = arith.constant 0 : index
    %14 = vector.load %arg2[%c2, %c0_9] : memref<8x256xf32, #tpu.memory_space<vmem>>, vector<1x128xf32>
    %cst_10 = arith.constant dense<0.000000e+00> : vector<8x128xf32>
    %15 = tpu.matmul %12, %13, %cst_10 {dimension_numbers = #tpu.dot_dimension_numbers<[1], [0], [0], [1], [0, 0, 1, 1], [], []>} : vector<8x128xf32>, vector<128x128xf32>, vector<8x128xf32> -> vector<8x128xf32>
    %16 = vector.broadcast %14 : vector<1x128xf32> to vector<8x128xf32>
    %17 = arith.addf %15, %16 : vector<8x128xf32>
    %18 = math.tanh %17 : vector<8x128xf32>
    %c384 = arith.constant 384 : index
    %c0_11 = arith.constant 0 : index
    %19 = vector.load %arg1[%c384, %c0_11] : memref<640x256xf32, #tpu.memory_space<vmem>>, vector<128x128xf32>
    %c3 = arith.constant 3 : index
    %c0_12 = arith.constant 0 : index
    %20 = vector.load %arg2[%c3, %c0_12] : memref<8x256xf32, #tpu.memory_space<vmem>>, vector<1x128xf32>
    %cst_13 = arith.constant dense<0.000000e+00> : vector<8x128xf32>
    %21 = tpu.matmul %18, %19, %cst_13 {dimension_numbers = #tpu.dot_dimension_numbers<[1], [0], [0], [1], [0, 0, 1, 1], [], []>} : vector<8x128xf32>, vector<128x128xf32>, vector<8x128xf32> -> vector<8x128xf32>
    %22 = vector.broadcast %20 : vector<1x128xf32> to vector<8x128xf32>
    %23 = arith.addf %21, %22 : vector<8x128xf32>
    %24 = math.tanh %23 : vector<8x128xf32>
    %c512 = arith.constant 512 : index
    %c0_14 = arith.constant 0 : index
    %25 = vector.load %arg1[%c512, %c0_14] : memref<640x256xf32, #tpu.memory_space<vmem>>, vector<128x256xf32>
    %c4 = arith.constant 4 : index
    %c0_15 = arith.constant 0 : index
    %26 = vector.load %arg2[%c4, %c0_15] : memref<8x256xf32, #tpu.memory_space<vmem>>, vector<1x256xf32>
    %cst_16 = arith.constant dense<0.000000e+00> : vector<8x256xf32>
    %27 = tpu.matmul %24, %25, %cst_16 {dimension_numbers = #tpu.dot_dimension_numbers<[1], [0], [0], [1], [0, 0, 1, 1], [], []>} : vector<8x128xf32>, vector<128x256xf32>, vector<8x256xf32> -> vector<8x256xf32>
    %28 = vector.broadcast %26 : vector<1x256xf32> to vector<8x256xf32>
    %29 = arith.addf %27, %28 : vector<8x256xf32>
    %30 = vector.extract_strided_slice %29 {offsets = [0, 0], sizes = [8, 128], strides = [1, 1]} : vector<8x256xf32> to vector<8x128xf32>
    %31 = vector.extract_strided_slice %29 {offsets = [0, 128], sizes = [8, 128], strides = [1, 1]} : vector<8x256xf32> to vector<8x128xf32>
    %32 = arith.mulf %30, %31 : vector<8x128xf32>
    %c0_17 = arith.constant 0 : index
    %c0_18 = arith.constant 0 : index
    %33 = vector.load %arg3[%c0_17, %c0_18] : memref<128x128xf32, #tpu.memory_space<vmem>>, vector<128x128xf32>
    %cst_19 = arith.constant dense<0.000000e+00> : vector<8x128xf32>
    %34 = tpu.matmul %32, %33, %cst_19 {dimension_numbers = #tpu.dot_dimension_numbers<[1], [0], [0], [1], [0, 0, 1, 1], [], []>} : vector<8x128xf32>, vector<128x128xf32>, vector<8x128xf32> -> vector<8x128xf32>
    %35 = tpu.iota {dimensions = array<i32: 1>} : vector<8x128xi32>
    %c0_i32 = arith.constant 0 : i32
    %36 = vector.broadcast %c0_i32 : i32 to vector<8x128xi32>
    %37 = arith.cmpi eq, %35, %36 : vector<8x128xi32>
    %cst_20 = arith.constant 2.000000e+01 : f32
    %38 = vector.broadcast %cst_20 : f32 to vector<8x128xf32>
    %39 = arith.cmpf ogt, %34, %38 : vector<8x128xf32>
    %cst_21 = arith.constant 2.000000e+01 : f32
    %40 = vector.broadcast %cst_21 : f32 to vector<8x128xf32>
    %41 = arith.minimumf %34, %40 : vector<8x128xf32>
    %42 = math.exp %41 : vector<8x128xf32>
    %43 = math.log1p %42 : vector<8x128xf32>
    %44 = arith.select %39, %34, %43 : vector<8x128xi1>, vector<8x128xf32>
    %45 = arith.select %37, %34, %44 : vector<8x128xi1>, vector<8x128xf32>
    %c4_i32 = arith.constant 4 : i32
    %46 = vector.broadcast %c4_i32 : i32 to vector<8x128xi32>
    %47 = arith.cmpi slt, %35, %46 : vector<8x128xi32>
    %cst_22 = arith.constant 0.000000e+00 : f32
    %48 = vector.broadcast %cst_22 : f32 to vector<8x128xf32>
    %49 = arith.select %47, %45, %48 : vector<8x128xi1>, vector<8x128xf32>
    %c0_23 = arith.constant 0 : index
    %c0_24 = arith.constant 0 : index
    %50 = vector.load %arg4[%c0_23, %c0_24] : memref<8x128xf32, #tpu.memory_space<vmem>>, vector<8x128xf32>
    tpu.vector_store %arg4[%c0_23, %c0_24], %49 {strides = array<i32>} : memref<8x128xf32, #tpu.memory_space<vmem>>, vector<8x128xf32>,
    return
  }
}

</mosaic_0001>

<bundles_post_ra>
// kernel: forward_impl.1
= control target key start
LH: loop header
LB: loop body
LE: loop exit
PB: predicated region body
PF: predicated region fallthrough
CT: control target
= control target key end

     0   :  { %9 = vsyncpa [#allocation3], 0  ;;  %s1240_s0 = inlined_call_operand.vmem [shape: f32[8,128], index: 0, kind: input, shape index: {}]   ;;  %s1241_s1 = inlined_call_operand.hbm [shape: f32[640,256], index: 1, kind: input, shape index: {}]   ;;  %s1242_s2 = inlined_call_operand.vmem [shape: f32[8,256], index: 2, kind: input, shape index: {}]   ;;  %s1243_s3 = inlined_call_operand.hbm [shape: f32[128,128], index: 3, kind: input, shape index: {}]   ;;  %s1244_s4 = inlined_call_operand.vmem [shape: f32[8,128], index: 4, kind: output, shape index: {}]  }
   0x1   :  { %10 = vsyncpa [#allocation5], 0  ;;  %s1110_s15 = smov [#allocation2]   ;;  %s1062_s19 = scalar_lea.hbm %s1241_s1, 20480 }
   0x2   :  { %s18_s16 = sshll.u32 %s1110_s15, 4  ;;  %p1063_p0 = scmp.ne.s32.totalorder %s1241_s1, %s1062_s19  ;;  %s19_s16 = int_to_ptr.vmem [resolvable:$true] %s18_s16 }
   0x3   :  { %p1066_p1 = scmp.lt.u32.totalorder %s1062_s19, %s1241_s1 }
   0x5   :  { %p1068_p2 = pnand %p1066_p1, %p1063_p0 }
   0x7   :  { %1071 = shalt.err (!%p1068_p2)
}
   0x8   :  { %s1072_s24 = scalar_lea.vmem %s19_s16, 20480  ;;  %p1077_p4 = scmp.lt.s32.totalorder %s19_s16, %s19_s16 }
   0x9   :  { %p1073_p3 = scmp.ne.s32.totalorder %s19_s16, %s1072_s24  ;;  %p1078_p5 = scmp.lt.s32.totalorder %s1072_s24, %s1072_s24 }
   0xb   :  { %p1079_p6 = por %p1078_p5, %p1077_p4 }
   0xd   :  { %p1080_p7 = pnand %p1079_p6, %p1073_p3 }
   0xf   :  { %1083 = shalt.err (!%p1080_p7)
}
  0x10   :  { %s1111_s25 = smov 256   ;;  %s1112_s26 = smov 16  }
  0x11   :  { %24 = dma.hbm_to_vmem [thread:$0]  %s1241_s1, 20480, %s19_s16, [#allocation3], %s1111_s25, %s1111_s25, %s1112_s26  }
  0x12   :  { %s1113_s29 = smov [#allocation4]   ;;  %s1084_s7 = scalar_lea.hbm %s1243_s3, 2048 }
  0x13   :  { %s32_s30 = sshll.u32 %s1113_s29, 4  ;;  %p1085_p8 = scmp.ne.s32.totalorder %s1243_s3, %s1084_s7  ;;  %s33_s30 = int_to_ptr.vmem [resolvable:$true] %s32_s30 }
  0x14   :  { %p1088_p9 = scmp.lt.u32.totalorder %s1084_s7, %s1243_s3 }
  0x16   :  { %p1090_p10 = pnand %p1088_p9, %p1085_p8 }
  0x18   :  { %1093 = shalt.err (!%p1090_p10)
}
  0x19   :  { %s1094_s12 = scalar_lea.vmem %s33_s30, 2048  ;;  %p1099_p12 = scmp.lt.s32.totalorder %s33_s30, %s33_s30 }
  0x1a   :  { %p1095_p11 = scmp.ne.s32.totalorder %s33_s30, %s1094_s12  ;;  %p1100_p13 = scmp.lt.s32.totalorder %s1094_s12, %s1094_s12 }
  0x1c   :  { %p1101_p0 = por %p1100_p13, %p1099_p12 }
  0x1e   :  { %p1102_p1 = pnand %p1101_p0, %p1095_p11 }
  0x20   :  { %1105 = shalt.err (!%p1102_p1)
}
  0x21   :  { %s1114_s1 = smov 128   ;;  %s1115_s13 = smov 8  }
  0x22   :  { %38 = dma.hbm_to_vmem [thread:$0]  %s1243_s3, 2048, %s33_s30, [#allocation5], %s1114_s1, %s1114_s1, %s1115_s13  }
  0x23   :  { %1106 = dma.done.wait [#allocation3], 20480  }
  0x24   :  { %1107 = vsyncadd [#allocation3], 4294946816 }
  0x25   :  { %1108 = dma.done.wait [#allocation5], 2048  }
  0x26   :  { %1109 = vsyncadd [#allocation5], 4294965248  ;;  %v1116_v0 = vmov 0.0|0.0   ;;  %vm1117_vm0 = vmmov 0   ;;  %v1118_v1 = vmov 0.0   ;;  %v46_v2 = vld [vmem:[#allocation2] sm:$0xff] }
  0x27   :  { %889 = vmatprep.subr.bf16.mxu0 %v1116_v0  ;;  %746 = vmatprep.mubr.msk.f32.mxu0 %vm1117_vm0, %v1118_v1  ;;  %v47_v3 = vld [vmem:[#allocation2 + $0x10] sm:$0xff]  ;;  %v48_v4 = vld [vmem:[#allocation2 + $0x20] sm:$0xff] }
  0x28   :  { %913 = vmatprep.subr.bf16.mxu1 %v1116_v0  ;;  %781 = vmatprep.mubr.msk.f32.mxu1 %vm1117_vm0, %v1118_v1  ;;  %v890_v5 = vpack.c.bf16 %v47_v3, %v46_v2  ;;  %v49_v6 = vld [vmem:[#allocation2 + $0x30] sm:$0xff]  ;;  %v50_v8 = vld [vmem:[#allocation2 + $0x40] sm:$0xff] }
  0x29   :  { %v893_v7 = vpack.c.bf16 %v49_v6, %v48_v4  ;;  %v51_v9 = vld [vmem:[#allocation2 + $0x50] sm:$0xff]  ;;  %v134_v10 = vld [vmem:[#allocation2 + $0x100] sm:$0xff] }
  0x2a   :  { %891 = vmatpush3.bf16.msra.mxu0 %v890_v5  ;;  %v135_v11 = vld [vmem:[#allocation2 + $0x110] sm:$0xff]  ;;  %v136_v12 = vld [vmem:[#allocation2 + $0x120] sm:$0xff]  ;;  %v896_v14 = vpack.c.bf16 %v51_v9, %v50_v8 }
  0x2b   :  { %892 = vmatprep.subr.bf16.mxu0 %v1116_v0  ;;  %v137_v13 = vld [vmem:[#allocation2 + $0x130] sm:$0xff]  ;;  %v914_v15 = vpack.c.bf16 %v135_v11, %v134_v10  ;;  %v52_v16 = vld [vmem:[#allocation2 + $0x60] sm:$0xff] }
  0x2c   :  { %v53_v17 = vld [vmem:[#allocation2 + $0x70] sm:$0xff]  ;;  %v917_v18 = vpack.c.bf16 %v137_v13, %v136_v12  ;;  %v138_v19 = vld [vmem:[#allocation2 + $0x140] sm:$0xff] }
  0x2d   :  { %915 = vmatpush3.bf16.msra.mxu1 %v914_v15  ;;  %v139_v20 = vld [vmem:[#allocation2 + $0x150] sm:$0xff]  ;;  %v899_v21 = vpack.c.bf16 %v53_v17, %v52_v16  ;;  %v54_v22 = vld [vmem:[#allocation2 + $0x80] sm:$0xff] }
  0x2e   :  { %894 = vmatpush3.bf16.msra.mxu0 %v893_v7  ;;  %916 = vmatprep.subr.bf16.mxu1 %v1116_v0  ;;  %v55_v23 = vld [vmem:[#allocation2 + $0x90] sm:$0xff]  ;;  %v920_v24 = vpack.c.bf16 %v139_v20, %v138_v19  ;;  %v140_v25 = vld [vmem:[#allocation2 + $0x160] sm:$0xff] }
  0x2f   :  { %895 = vmatprep.subr.bf16.mxu0 %v1116_v0  ;;  %v141_v26 = vld [vmem:[#allocation2 + $0x170] sm:$0xff]  ;;  %v902_v27 = vpack.c.bf16 %v55_v23, %v54_v22  ;;  %v56_v28 = vld [vmem:[#allocation2 + $0xa0] sm:$0xff] }
  0x30   :  { %v57_v29 = vld [vmem:[#allocation2 + $0xb0] sm:$0xff]  ;;  %v923_v30 = vpack.c.bf16 %v141_v26, %v140_v25  ;;  %v142_v31 = vld [vmem:[#allocation2 + $0x180] sm:$0xff] }
  0x31   :  { %918 = vmatpush3.bf16.msra.mxu1 %v917_v18  ;;  %v143_v32 = vld [vmem:[#allocation2 + $0x190] sm:$0xff]  ;;  %v905_v33 = vpack.c.bf16 %v57_v29, %v56_v28  ;;  %v58_v34 = vld [vmem:[#allocation2 + $0xc0] sm:$0xff] }
  0x32   :  { %897 = vmatpush3.bf16.msra.mxu0 %v896_v14  ;;  %919 = vmatprep.subr.bf16.mxu1 %v1116_v0  ;;  %v59_v35 = vld [vmem:[#allocation2 + $0xd0] sm:$0xff]  ;;  %v926_v36 = vpack.c.bf16 %v143_v32, %v142_v31  ;;  %v60_v38 = vld [vmem:[#allocation2 + $0xe0] sm:$0xff] }
  0x33   :  { %898 = vmatprep.subr.bf16.mxu0 %v1116_v0  ;;  %v908_v37 = vpack.c.bf16 %v59_v35, %v58_v34  ;;  %v61_v39 = vld [vmem:[#allocation2 + $0xf0] sm:$0xff]  ;;  %v45_v41 = vld [vmem:[%s1240_s0] sm:$0xff] }
  0x34   :  { %v911_v40 = vpack.c.bf16 %v61_v39, %v60_v38  ;;  %v144_v42 = vld [vmem:[#allocation2 + $0x1a0] sm:$0xff]  ;;  %v145_v43 = vld [vmem:[#allocation2 + $0x1b0] sm:$0xff] }
  0x35   :  { %921 = vmatpush3.bf16.msra.mxu1 %v920_v24  ;;  %v929_v44 = vpack.c.bf16 %v145_v43, %v144_v42  ;;  %v146_v45 = vld [vmem:[#allocation2 + $0x1c0] sm:$0xff]  ;;  %v147_v46 = vld [vmem:[#allocation2 + $0x1d0] sm:$0xff] }
  0x36   :  { %900 = vmatpush3.bf16.msra.mxu0 %v899_v21  ;;  %922 = vmatprep.subr.bf16.mxu1 %v1116_v0  ;;  %v932_v47 = vpack.c.bf16 %v147_v46, %v146_v45  ;;  %v148_v48 = vld [vmem:[#allocation2 + $0x1e0] sm:$0xff]  ;;  %v149_v49 = vld [vmem:[#allocation2 + $0x1f0] sm:$0xff] }
  0x37   :  { %901 = vmatprep.subr.bf16.mxu0 %v1116_v0  ;;  %v935_v50 = vpack.c.bf16 %v149_v49, %v148_v48  ;;  %v222_v51 = vld [vmem:[#allocation2 + $0x200] sm:$0xff]  ;;  %v223_v52 = vld [vmem:[#allocation2 + $0x210] sm:$0xff]  ;;  %v401_v48 = vld [vmem:[#allocation2 + $0x418] sm:$0xff] }
  0x38   :  { %v224_v53 = vld [vmem:[#allocation2 + $0x220] sm:$0xff]  ;;  %v938_v54 = vpack.c.bf16 %v223_v52, %v222_v51  ;;  %v225_v55 = vld [vmem:[#allocation2 + $0x230] sm:$0xff]  ;;  %v403_v52 = vld [vmem:[#allocation2 + $0x428] sm:$0xff] }
  0x39   :  { %924 = vmatpush3.bf16.msra.mxu1 %v923_v30  ;;  %v941_v56 = vpack.c.bf16 %v225_v55, %v224_v53  ;;  %v226_v57 = vld [vmem:[#allocation2 + $0x240] sm:$0xff]  ;;  %v227_v58 = vld [vmem:[#allocation2 + $0x250] sm:$0xff]  ;;  %v405_v53 = vld [vmem:[#allocation2 + $0x438] sm:$0xff] }
  0x3a   :  { %903 = vmatpush3.bf16.msra.mxu0 %v902_v27  ;;  %925 = vmatprep.subr.bf16.mxu1 %v1116_v0  ;;  %v944_v59 = vpack.c.bf16 %v227_v58, %v226_v57  ;;  %v228_v60 = vld [vmem:[#allocation2 + $0x260] sm:$0xff]  ;;  %v229_v61 = vld [vmem:[#allocation2 + $0x270] sm:$0xff]  ;;  %v989_v55 = vpack.c.bf16 %v405_v53, %v403_v52  ;;  %v407_v58 = vld [vmem:[#allocation2 + $0x448] sm:$0xff] }
  0x3b   :  { %904 = vmatprep.subr.bf16.mxu0 %v1116_v0  ;;  %v947_v62 = vpack.c.bf16 %v229_v61, %v228_v60  ;;  %v230_v63 = vld [vmem:[#allocation2 + $0x280] sm:$0xff]  ;;  %v231_v2 = vld [vmem:[#allocation2 + $0x290] sm:$0xff]  ;;  %v526_v53 = vld [vmem:[#allocation4 + $0x58] sm:$0xff] }
  0x3c   :  { %v950_v3 = vpack.c.bf16 %v231_v2, %v230_v63  ;;  %v62_v4 = vld [vmem:[%s1242_s2] ss:$0 sm:$0xff]  ;;  %v233_v10 = vld [vmem:[#allocation2 + $0x2b0] sm:$0xff]  ;;  %v411_v2 = vld [vmem:[#allocation2 + $0x468] sm:$0xff] }
  0x3d   :  { %927 = vmatpush3.bf16.msra.mxu1 %v926_v36  ;;  %v232_v9 = vld [vmem:[#allocation2 + $0x2a0] sm:$0xff]  ;;  %v235_v13 = vld [vmem:[#allocation2 + $0x2d0] sm:$0xff] }
  0x3e   :  { %906 = vmatpush3.bf16.msra.mxu0 %v905_v33  ;;  %928 = vmatprep.subr.bf16.mxu1 %v1116_v0  ;;  %v953_v11 = vpack.c.bf16 %v233_v10, %v232_v9  ;;  %v234_v12 = vld [vmem:[#allocation2 + $0x2c0] sm:$0xff]  ;;  %v237_v16 = vld [vmem:[#allocation2 + $0x2f0] sm:$0xff]  ;;  %v417_v9 = vld [vmem:[#allocation2 + $0x498] sm:$0xff] }
  0x3f   :  { %907 = vmatprep.subr.bf16.mxu0 %v1116_v0  ;;  %v956_v14 = vpack.c.bf16 %v235_v13, %v234_v12  ;;  %v236_v15 = vld [vmem:[#allocation2 + $0x2e0] sm:$0xff]  ;;  %v311_v19 = vld [vmem:[#allocation2 + $0x310] sm:$0xff] }
  0x40   :  { %v959_v17 = vpack.c.bf16 %v237_v16, %v236_v15  ;;  %v310_v18 = vld [vmem:[#allocation2 + $0x300] sm:$0xff]  ;;  %v313_v22 = vld [vmem:[#allocation2 + $0x330] sm:$0xff] }
  0x41   :  { %930 = vmatpush3.bf16.msra.mxu1 %v929_v44  ;;  %v312_v20 = vld [vmem:[#allocation2 + $0x320] sm:$0xff]  ;;  %v962_v21 = vpack.c.bf16 %v311_v19, %v310_v18  ;;  %v315_v25 = vld [vmem:[#allocation2 + $0x350] sm:$0xff] }
  0x42   :  { %909 = vmatpush3.bf16.msra.mxu0 %v908_v37  ;;  %931 = vmatprep.subr.bf16.mxu1 %v1116_v0  ;;  %v965_v23 = vpack.c.bf16 %v313_v22, %v312_v20  ;;  %v314_v24 = vld [vmem:[#allocation2 + $0x340] sm:$0xff]  ;;  %v317_v28 = vld [vmem:[#allocation2 + $0x370] sm:$0xff]  ;;  %v419_v20 = vld [vmem:[#allocation2 + $0x4a8] sm:$0xff] }
  0x43   :  { %910 = vmatprep.subr.bf16.mxu0 %v1116_v0  ;;  %v968_v26 = vpack.c.bf16 %v315_v25, %v314_v24  ;;  %v316_v27 = vld [vmem:[#allocation2 + $0x360] sm:$0xff]  ;;  %v319_v31 = vld [vmem:[#allocation2 + $0x390] sm:$0xff] }
  0x44   :  { %v971_v29 = vpack.c.bf16 %v317_v28, %v316_v27  ;;  %v318_v30 = vld [vmem:[#allocation2 + $0x380] sm:$0xff]  ;;  %v321_v39 = vld [vmem:[#allocation2 + $0x3b0] sm:$0xff]  ;;  %v425_v27 = vld [vmem:[#allocation2 + $0x4d8] sm:$0xff] }
  0x45   :  { %933 = vmatpush3.bf16.msra.mxu1 %v932_v47  ;;  %v974_v32 = vpack.c.bf16 %v319_v31, %v318_v30  ;;  %v150_v33 = vld [vmem:[%s1242_s2 + $0x1] ss:$0 sm:$0xff]  ;;  %v323_v42 = vld [vmem:[#allocation2 + $0x3d0] sm:$0xff]  ;;  %v399_v47 = vld [vmem:[#allocation2 + $0x408] sm:$0xff] }
  0x46   :  { %912 = vmatpush3.bf16.msra.mxu0 %v911_v40  ;;  %934 = vmatprep.subr.bf16.mxu1 %v1116_v0  ;;  %v320_v38 = vld [vmem:[#allocation2 + $0x3a0] sm:$0xff]  ;;  %v325_v45 = vld [vmem:[#allocation2 + $0x3f0] sm:$0xff]  ;;  %v427_v31 = vld [vmem:[#allocation2 + $0x4e8] sm:$0xff] }
  0x47   :  { %937 = vmatprep.subr.bf16.mxu0 %v1116_v0  ;;  %v977_v40 = vpack.c.bf16 %v321_v39, %v320_v38  ;;  %v324_v44 = vld [vmem:[#allocation2 + $0x3e0] sm:$0xff]  ;;  %v400_v51 = vld [vmem:[#allocation2 + $0x410] sm:$0xff]  ;;  %v516_v38 = vld [vmem:[#allocation4 + $0x8] sm:$0xff] }
  0x48   :  { %v983_v46 = vpack.c.bf16 %v325_v45, %v324_v44  ;;  %v398_v49 = vld [vmem:[#allocation2 + $0x400] sm:$0xff]  ;;  %v404_v57 = vld [vmem:[#allocation2 + $0x430] sm:$0xff]  ;;  %v520_v44 = vld [vmem:[#allocation4 + $0x28] sm:$0xff] }
  0x49   :  { %747 = vmatmul.mubr.f32.vlgmr.msra.gmra.mrb[0].mxu0 %v45_v41  ;;  %936 = vmatpush3.bf16.msra.mxu1 %v935_v50  ;;  %v322_v41 = vld [vmem:[#allocation2 + $0x3c0] sm:$0xff]  ;;  %v985_v50 = vpack.c.bf16 %v401_v48, %v399_v47  ;;  %v408_v63 = vld [vmem:[#allocation2 + $0x450] sm:$0xff]  ;;  %v522_v47 = vld [vmem:[#allocation4 + $0x38] sm:$0xff] }
  0x4a   :  { %816 = vmatprep.mubr.msk.f32.mxu0 %vm1117_vm0, %v1118_v1  ;;  %961 = vmatprep.subr.bf16.mxu1 %v1116_v0  ;;  %v980_v43 = vpack.c.bf16 %v323_v42, %v322_v41  ;;  %v414_v12 = vld [vmem:[#allocation2 + $0x480] sm:$0xff]  ;;  %v416_v13 = vld [vmem:[#allocation2 + $0x490] sm:$0xff]  ;;  %v518_v41 = vld [vmem:[#allocation4 + $0x18] sm:$0xff] }
  0x4b   :  { %939 = vmatpush3.bf16.msra.mxu0 %v938_v54  ;;  %v987_v54 = vpack.c.bf16 %v400_v51, %v398_v49  ;;  %v238_v15 = vld [vmem:[%s1242_s2 + $0x2] ss:$0 sm:$0xff]  ;;  %v420_v24 = vld [vmem:[#allocation2 + $0x4b0] sm:$0xff] }
  0x4c   :  { %940 = vmatprep.subr.bf16.mxu0 %v1116_v0  ;;  %v422_v28 = vld [vmem:[#allocation2 + $0x4c0] sm:$0xff]  ;;  %v424_v30 = vld [vmem:[#allocation2 + $0x4d0] sm:$0xff] }
  0x4d   :  { %v517_v39 = vld [vmem:[#allocation4 + $0x10] sm:$0xff]  ;;  %v523_v49 = vld [vmem:[#allocation4 + $0x40] sm:$0xff] }
  0x4e   :  { %v1021_v42 = vpack.c.bf16 %v518_v41, %v517_v39  ;;  %v525_v52 = vld [vmem:[#allocation4 + $0x50] sm:$0xff] }
  0x4f   :  { %942 = vmatpush3.bf16.msra.mxu0 %v941_v56  ;;  %v402_v56 = vld [vmem:[#allocation2 + $0x420] sm:$0xff] }
  0x50   :  { %943 = vmatprep.subr.bf16.mxu0 %v1116_v0  ;;  %v991_v60 = vpack.c.bf16 %v404_v57, %v402_v56  ;;  %v528_v56 = vld [vmem:[#allocation4 + $0x68] sm:$0xff] }
  0x53   :  { %945 = vmatpush3.bf16.msra.mxu0 %v944_v59  ;;  %v409_v59 = vld [vmem:[#allocation2 + $0x458] sm:$0xff] }
  0x54   :  { %946 = vmatprep.subr.bf16.mxu0 %v1116_v0  ;;  %v993_v61 = vpack.c.bf16 %v409_v59, %v407_v58  ;;  %v326_v58 = vld [vmem:[%s1242_s2 + $0x3] ss:$0 sm:$0xff] }
  0x57   :  { %948 = vmatpush3.bf16.msra.mxu0 %v947_v62  ;;  %v406_v62 = vld [vmem:[#allocation2 + $0x440] sm:$0xff] }
  0x58   :  { %949 = vmatprep.subr.bf16.mxu0 %v1116_v0 }
  0x5b   :  { %951 = vmatpush3.bf16.msra.mxu0 %v950_v3  ;;  %v413_v3 = vld [vmem:[#allocation2 + $0x478] sm:$0xff] }
  0x5c   :  { %952 = vmatprep.subr.bf16.mxu0 %v1116_v0 }
  0x5f   :  { %954 = vmatpush3.bf16.msra.mxu0 %v953_v11 }
  0x60   :  { %955 = vmatprep.subr.bf16.mxu0 %v1116_v0 }
  0x63   :  { %957 = vmatpush3.bf16.msra.mxu0 %v956_v14  ;;  %v1003_v14 = vpack.c.bf16 %v416_v13, %v414_v12 }
  0x64   :  { %958 = vmatprep.subr.bf16.mxu0 %v1116_v0 }
  0x67   :  { %960 = vmatpush3.bf16.msra.mxu0 %v959_v17 }
  0x68   :  { %986 = vmatprep.subr.bf16.mxu0 %v985_v50  ;;  %v524_v50 = vld [vmem:[#allocation4 + $0x48] sm:$0xff] }
  0x69   :  { %v1030_v51 = vpack.c.bf16 %v524_v50, %v523_v49 }
 0x11c   :  { %v129_v5 = vpop.f32.mrb[0].mxu0 }
 0x11d   :  { %v130_v6 = vadd.f32 %v129_v5, %v62_v4  ;;  %v748_v7 = vpop.f32.mrb[1].mxu0  ;;  %v995_v4 = vpack.c.bf16 %v408_v63, %v406_v62  ;;  %v997_v5 = vpack.c.bf16 %v413_v3, %v411_v2  ;;  %v529_v63 = vld [vmem:[#allocation4 + $0x70] sm:$0xff]  ;;  %v530_v2 = vld [vmem:[#allocation4 + $0x78] sm:$0xff] }
 0x11e   :  { %v412_v7 = vld [vmem:[#allocation2 + $0x470] sm:$0xff]  ;;  %v1039_v3 = vpack.c.bf16 %v530_v2, %v529_v63 }
 0x11f   :  { %1050 = vtanh.f32 %v130_v6  ;;  %v410_v6 = vld [vmem:[#allocation2 + $0x460] sm:$0xff] }
 0x120   :  { %v999_v10 = vpack.c.bf16 %v412_v7, %v410_v6 }
 0x129   :  { %v1051_v8 = vpop.eup %1050 }
 0x12a   :  { %782 = vmatmul.mubr.f32.vlgmr.msra.gmra.mrb[0].mxu1 %v1051_v8  ;;  %v415_v8 = vld [vmem:[#allocation2 + $0x488] sm:$0xff] }
 0x12b   :  { %851 = vmatprep.mubr.msk.f32.mxu1 %vm1117_vm0, %v1118_v1  ;;  %963 = vmatpush3.bf16.msra.mxu1 %v962_v21  ;;  %v1001_v11 = vpack.c.bf16 %v417_v9, %v415_v8  ;;  %v421_v21 = vld [vmem:[#allocation2 + $0x4b8] sm:$0xff] }
 0x12c   :  { %964 = vmatprep.subr.bf16.mxu1 %v1116_v0  ;;  %v1005_v22 = vpack.c.bf16 %v421_v21, %v419_v20 }
 0x12f   :  { %966 = vmatpush3.bf16.msra.mxu1 %v965_v23  ;;  %v418_v23 = vld [vmem:[#allocation2 + $0x4a0] sm:$0xff] }
 0x130   :  { %967 = vmatprep.subr.bf16.mxu1 %v1116_v0  ;;  %v1007_v25 = vpack.c.bf16 %v420_v24, %v418_v23 }
 0x133   :  { %969 = vmatpush3.bf16.msra.mxu1 %v968_v26  ;;  %v423_v26 = vld [vmem:[#allocation2 + $0x4c8] sm:$0xff] }
 0x134   :  { %970 = vmatprep.subr.bf16.mxu1 %v1116_v0 }
 0x137   :  { %972 = vmatpush3.bf16.msra.mxu1 %v971_v29  ;;  %v1009_v29 = vpack.c.bf16 %v425_v27, %v423_v26 }
 0x138   :  { %973 = vmatprep.subr.bf16.mxu1 %v1116_v0 }
 0x13b   :  { %975 = vmatpush3.bf16.msra.mxu1 %v974_v32  ;;  %v429_v32 = vld [vmem:[#allocation2 + $0x4f8] sm:$0xff] }
 0x13c   :  { %976 = vmatprep.subr.bf16.mxu1 %v1116_v0 }
 0x13f   :  { %978 = vmatpush3.bf16.msra.mxu1 %v977_v40 }
 0x140   :  { %979 = vmatprep.subr.bf16.mxu1 %v1116_v0 }
 0x143   :  { %981 = vmatpush3.bf16.msra.mxu1 %v980_v43  ;;  %v519_v43 = vld [vmem:[#allocation4 + $0x20] sm:$0xff] }
 0x144   :  { %982 = vmatprep.subr.bf16.mxu1 %v1116_v0  ;;  %v1024_v45 = vpack.c.bf16 %v520_v44, %v519_v43 }
 0x147   :  { %984 = vmatpush3.bf16.msra.mxu1 %v983_v46  ;;  %v521_v46 = vld [vmem:[#allocation4 + $0x30] sm:$0xff] }
 0x148   :  { %1017 = vmatprep.subr.bf16.mxu1 %v1116_v0  ;;  %v1027_v48 = vpack.c.bf16 %v522_v47, %v521_v46 }
 0x1fd   :  { %v217_v34 = vpop.f32.mrb[0].mxu1 }
 0x1fe   :  { %v218_v35 = vadd.f32 %v217_v34, %v150_v33  ;;  %v783_v36 = vpop.f32.mrb[1].mxu1  ;;  %v1011_v33 = vpack.c.bf16 %v424_v30, %v422_v28  ;;  %v1013_v34 = vpack.c.bf16 %v429_v32, %v427_v31 }
 0x1ff   :  { %v428_v36 = vld [vmem:[#allocation2 + $0x4f0] sm:$0xff] }
 0x200   :  { %1052 = vtanh.f32 %v218_v35  ;;  %v426_v35 = vld [vmem:[#allocation2 + $0x4e0] sm:$0xff] }
 0x20a   :  { %v1053_v37 = vpop.eup %1052 }
 0x20b   :  { %817 = vmatmul.mubr.f32.vlgmr.msra.gmra.mrb[2].mxu0 %v1053_v37  ;;  %v515_v37 = vld [vmem:[#allocation4] sm:$0xff] }
 0x20c   :  { %507 = vmatprep.mubr.f32.mxu0 %v1118_v1  ;;  %988 = vmatpush1.bf16.msra.mxu0 %v987_v54  ;;  %v1018_v40 = vpack.c.bf16 %v516_v38, %v515_v37  ;;  %v1033_v54 = vpack.c.bf16 %v526_v53, %v525_v52 }
 0x20d   :  { %990 = vmatprep.subr.bf16.mxu0 %v989_v55  ;;  %v527_v55 = vld [vmem:[#allocation4 + $0x60] sm:$0xff] }
 0x20e   :  { %v1036_v57 = vpack.c.bf16 %v528_v56, %v527_v55 }
 0x210   :  { %992 = vmatpush1.bf16.msra.mxu0 %v991_v60 }
 0x211   :  { %994 = vmatprep.subr.bf16.mxu0 %v993_v61 }
 0x214   :  { %996 = vmatpush1.bf16.msra.mxu0 %v995_v4  ;;  %v433_v4 = vlaneseq }
 0x215   :  { %998 = vmatprep.subr.bf16.mxu0 %v997_v5 }
 0x216   :  { %v434_v5 = vshrl.u32 %v433_v4, 7  ;;  %v602_v23 = vand.u32 127, %v433_v4 }
 0x218   :  { %1000 = vmatpush1.bf16.msra.mxu0 %v999_v10  ;;  %v435_v6 = vsub.s32 0, %v434_v5  ;;  %v439_v7 = vsub.s32 1, %v434_v5  ;;  %vm603_vm1 = vcmp.eq.s32.totalorder %v602_v23, 0  ;;  %vm619_vm4 = vcmp.lt.s32.totalorder %v602_v23, 4 }
 0x219   :  { %1002 = vmatprep.subr.bf16.mxu0 %v1001_v11 }
 0x21c   :  { %1004 = vmatpush1.bf16.msra.mxu0 %v1003_v14 }
 0x21d   :  { %1006 = vmatprep.subr.bf16.mxu0 %v1005_v22 }
 0x220   :  { %1008 = vmatpush1.bf16.msra.mxu0 %v1007_v25 }
 0x221   :  { %1010 = vmatprep.subr.bf16.mxu0 %v1009_v29 }
 0x224   :  { %1012 = vmatpush1.bf16.msra.mxu0 %v1011_v33 }
 0x225   :  { %1014 = vmatprep.subr.bf16.mxu0 %v1013_v34 }
 0x2de   :  { %v305_v16 = vpop.f32.mrb[2].mxu0 }
 0x2df   :  { %v306_v17 = vadd.f32 %v305_v16, %v238_v15  ;;  %v818_v18 = vpop.f32.mrb[3].mxu0 }
 0x2e1   :  { %1054 = vtanh.f32 %v306_v17 }
 0x2eb   :  { %v1055_v19 = vpop.eup %1054 }
 0x2ec   :  { %852 = vmatmul.mubr.f32.vlgmr.msra.gmra.mrb[2].mxu1 %v1055_v19 }
 0x2ed   :  { %886 = vmatprep.mubr.msk.f32.mxu1 %vm1117_vm0, %v1118_v1  ;;  %v1015_v1 = vpack.c.bf16 %v428_v36, %v426_v35  ;;  %1019 = vmatpush3.bf16.msra.mxu1 %v1018_v40 }
 0x2ee   :  { %1020 = vmatprep.subr.bf16.mxu1 %v1116_v0 }
 0x2ef   :  { %1016 = vmatpush1.bf16.msra.mxu0 %v1015_v1 }
 0x2f1   :  { %1022 = vmatpush3.bf16.msra.mxu1 %v1021_v42 }
 0x2f2   :  { %1023 = vmatprep.subr.bf16.mxu1 %v1116_v0 }
 0x2f5   :  { %1025 = vmatpush3.bf16.msra.mxu1 %v1024_v45 }
 0x2f6   :  { %1026 = vmatprep.subr.bf16.mxu1 %v1116_v0 }
 0x2f9   :  { %1028 = vmatpush3.bf16.msra.mxu1 %v1027_v48 }
 0x2fa   :  { %1029 = vmatprep.subr.bf16.mxu1 %v1116_v0 }
 0x2fd   :  { %1031 = vmatpush3.bf16.msra.mxu1 %v1030_v51 }
 0x2fe   :  { %1032 = vmatprep.subr.bf16.mxu1 %v1116_v0 }
 0x301   :  { %1034 = vmatpush3.bf16.msra.mxu1 %v1033_v54 }
 0x302   :  { %1035 = vmatprep.subr.bf16.mxu1 %v1116_v0 }
 0x305   :  { %1037 = vmatpush3.bf16.msra.mxu1 %v1036_v57 }
 0x306   :  { %1038 = vmatprep.subr.bf16.mxu1 %v1116_v0  ;;  %v628_v0 = vld [vmem:[%s1242_s2 + $0x4] ss:$8 sm:$0x3] }
 0x307   :  { %v436_v8 = vrot.slane %v628_v0, %v435_v6  ;;  %v440_v9 = vrot.slane %v628_v0, %v439_v7 }
 0x309   :  { %1040 = vmatpush3.bf16.msra.mxu1 %v1039_v3 }
 0x3bf   :  { %v393_v59 = vpop.f32.mrb[2].mxu1 }
 0x3c0   :  { %v394_v60 = vadd.f32 %v393_v59, %v326_v58  ;;  %v853_v61 = vpop.f32.mrb[3].mxu1 }
 0x3c2   :  { %1056 = vtanh.f32 %v394_v60 }
 0x3cc   :  { %v1057_v62 = vpop.eup %1056 }
 0x3cd   :  { %508 = vmatmul.mubr.f32.vlgmr.msra.gmra.mrb[4].mxu0 %v1057_v62 }
 0x4a0   :  { %v509_v10 = vpop.f32.mrb[4].mxu0 }
 0x4a1   :  { %v510_v11 = vadd.f32 %v509_v10, %v436_v8  ;;  %v511_v12 = vpop.f32.mrb[5].mxu0 }
 0x4a2   :  { %v512_v13 = vadd.f32 %v511_v12, %v440_v9 }
 0x4a4   :  { %v514_v14 = vmul.f32 %v512_v13, %v510_v11 }
 0x4a6   :  { %887 = vmatmul.mubr.f32.vlgmr.msra.gmra.mrb[4].mxu1 %v514_v14 }
 0x579   :  { %v597_v15 = vpop.f32.mrb[4].mxu1 }
 0x57a   :  { %v605_v16 = vmin.f32 %v597_v15, 20.0  ;;  %v888_v17 = vpop.f32.mrb[5].mxu1  ;;  %vm604_vm3 = vcmp.gt.f32.partialorder %v597_v15, 20.0 }
 0x57c   :  { %v606_v18 = vmul.f32 1.442695, %v605_v16 }
 0x57e   :  { %1058 = vpow2.f32 %v606_v18 }
 0x588   :  { %v1059_v19 = vpop.eup %1058 }
 0x589   :  { %v608_v20 = vadd.f32 1.0, %v1059_v19  ;;  %v611_v21 = vmul.f32 -0.5, %v1059_v19  ;;  %v614_v24 = vand.u32 2147483647, %v1059_v19 }
 0x58b   :  { %1060 = vlog2.f32 %v608_v20  ;;  %v612_v22 = vadd.f32 1.0, %v611_v21  ;;  %vm615_vm2 = vcmp.lt.f32.partialorder %v614_v24, 0.0004427343 }
 0x58d   :  { %v613_v27 = vmul.f32 %v1059_v19, %v612_v22 }
 0x595   :  { %v1061_v25 = vpop.eup %1060 }
 0x596   :  { %v610_v26 = vmul.f32 0.6931472, %v1061_v25 }
 0x598   :  { %v616_v28 = vsel %vm615_vm2, %v613_v27, %v610_v26 }
 0x599   :  { %v617_v29 = vsel %vm604_vm3, %v597_v15, %v616_v28 }
 0x59a   :  { %v618_v30 = vsel %vm603_vm1, %v597_v15, %v617_v29 }
 0x59b   :  { %v620_v31 = vsel %vm619_vm4, %v618_v30, 0.0 }
 0x59c   :  { %621 = vst [vmem:[%s1244_s4] sm:$0xff] %v620_v31 }
 0x59d   :  { %626 = vsyncpa [#allocation3], 1 }
 0x59e   :  { %627 = vsyncpa [#allocation5], 1 }

</bundles_post_ra>
